<compile_context>
chip_gen: v7x
topology: tpu7x:2x2x1
jax: 0.10.0
libtpu: 0.0.40
codegen_flags: <defaults>
</compile_context>

<pallas_src>
import jax
import jax.numpy as jnp
from jax.experimental import pallas as pl
from jax.experimental.pallas import tpu as pltpu


def _round_up(x, m):
    return (x + m - 1) // m * m


def _mlp_kernel(x_ref, w1_ref, w2_ref, o_ref, acc_ref):
    # x_ref:  (tm, IN_p)   w1_ref: (IN_p, tk)   w2_ref: (tk, tn)
    # o_ref:  (tm, tn)     acc_ref: (tm, tn) f32 scratch (resident across HID axis)
    k = pl.program_id(2)

    @pl.when(k == 0)
    def _():
        acc_ref[...] = jnp.zeros_like(acc_ref)

    # fc1 chunk: (tm, IN_p) @ (IN_p, tk) -> (tm, tk), native-dtype operands on the
    # MXU with f32 accumulation (no explicit up-cast of operands).
    h = jnp.dot(x_ref[...], w1_ref[...], preferred_element_type=jnp.float32)

    # GELU, tanh approximation (matches torch.nn.GELU(approximate='tanh')):
    #   0.5 * x * (1 + tanh( sqrt(2/pi) * (x + 0.044715 * x^3) ))
    # Evaluated in f32; tanh goes to the EUP slot and is hidden once MXU-bound.
    c = jnp.float32(0.7978845608028654)  # sqrt(2/pi)
    g = 0.5 * h * (1.0 + jnp.tanh(c * (h + 0.044715 * (h * h) * h)))

    # fc2 partial: (tm, tk) @ (tk, tn) accumulated into the f32 scratch.
    acc_ref[...] += jnp.dot(g.astype(w2_ref.dtype), w2_ref[...],
                            preferred_element_type=jnp.float32)

    @pl.when(k == pl.num_programs(2) - 1)
    def _():
        o_ref[...] = acc_ref[...].astype(o_ref.dtype)


def mlp_pallas(x, w1_t, w2_t, *, tm=256, tn=256, tk=256,
               vmem_limit_bytes=32 << 20):
    """x: (..., IN); w1_t: (IN, HID); w2_t: (HID, OUT). Returns (..., OUT)."""
    in_features = x.shape[-1]
    hid = w1_t.shape[1]
    out_features = w2_t.shape[1]
    assert w1_t.shape[0] == in_features and w2_t.shape[0] == hid

    lead = x.shape[:-1]
    x2d = x.reshape(-1, in_features)
    M = x2d.shape[0]

    # Pad feature dims to multiples of 128 (lane-dense loads/stores, full vregs)
    # and M to a multiple of the row tile.  Zero padding is exact: padded HID
    # columns give gelu(0) = 0 and contribute nothing to fc2.
    in_p = _round_up(in_features, 128)
    hid_p = _round_up(hid, 128)
    out_p = _round_up(out_features, 128)

    tm = min(tm, _round_up(M, 8))        # keep sublane-aligned, don't over-tile tiny M
    tn = min(tn, out_p)
    tk = min(tk, hid_p)
    m_p = _round_up(M, tm)

    x_pad = jnp.pad(x2d, ((0, m_p - M), (0, in_p - in_features)))
    w1_pad = jnp.pad(w1_t, ((0, in_p - in_features), (0, hid_p - hid)))
    w2_pad = jnp.pad(w2_t, ((0, hid_p - hid), (0, out_p - out_features)))

    grid = (m_p // tm, out_p // tn, hid_p // tk)

    out = pl.pallas_call(
        _mlp_kernel,
        out_shape=jax.ShapeDtypeStruct((m_p, out_p), x.dtype),
        grid_spec=pltpu.PrefetchScalarGridSpec(
            num_scalar_prefetch=0,
            grid=grid,
            in_specs=[
                pl.BlockSpec((tm, in_p), lambda i, j, k: (i, 0)),   # x rows (full IN)
                pl.BlockSpec((in_p, tk), lambda i, j, k: (0, k)),   # w1^T chunk over HID
                pl.BlockSpec((tk, tn), lambda i, j, k: (k, j)),     # w2^T chunk HIDxOUT
            ],
            out_specs=pl.BlockSpec((tm, tn), lambda i, j, k: (i, j)),
            scratch_shapes=[pltpu.VMEM((tm, tn), jnp.float32)],
        ),
        compiler_params=pltpu.CompilerParams(
            dimension_semantics=("parallel", "parallel", "arbitrary"),
            vmem_limit_bytes=vmem_limit_bytes,
        ),
    )(x_pad, w1_pad, w2_pad)

    out = out[:M, :out_features]
    return out.reshape(*lead, out_features)


def mlp_reference(x, w1_t, w2_t):
    h = jnp.dot(x.astype(jnp.float32), w1_t.astype(jnp.float32))
    c = jnp.float32(0.7978845608028654)
    g = 0.5 * h * (1.0 + jnp.tanh(c * (h + 0.044715 * h ** 3)))
    return jnp.dot(g, w2_t.astype(jnp.float32)).astype(x.dtype)


if __name__ == "__main__":
    # Small shapes consistent with the module: batch=2, seq=8, in=32, hidden=64, out=32.
    batch, seq = 2, 8
    in_features, hidden_features, out_features = 32, 64, 32

    key = jax.random.PRNGKey(0)
    kx, k1, k2 = jax.random.split(key, 3)

    x = jax.random.normal(kx, (batch, seq, in_features), dtype=jnp.float32)
    # Deterministic "Linear" weights: PyTorch shape is (out, in); pass transposed.
    fc1_w = jax.random.normal(k1, (hidden_features, in_features), jnp.float32) * 0.05
    fc2_w = jax.random.normal(k2, (out_features, hidden_features), jnp.float32) * 0.05
    w1_t = fc1_w.T  # (in, hidden)
    w2_t = fc2_w.T  # (hidden, out)

    y = mlp_pallas(x, w1_t, w2_t)
    y = jax.block_until_ready(y)

    y_ref = mlp_reference(x, w1_t, w2_t)
    assert y.shape == (batch, seq, out_features), y.shape
    assert jnp.allclose(y, y_ref, atol=2e-5, rtol=2e-5), "mismatch vs reference"

    print("KERNEL_OK")
</pallas_src>

<mosaic_0001>
module attributes {stable_mosaic.version = 11 : i64} {
  func.func @_mlp_kernel(%arg0: i32, %arg1: i32, %arg2: i32, %arg3: memref<16x128xf32, #tpu.memory_space<vmem>>, %arg4: memref<128x128xf32, #tpu.memory_space<vmem>>, %arg5: memref<128x128xf32, #tpu.memory_space<vmem>>, %arg6: memref<16x128xf32, #tpu.memory_space<vmem>>, %arg7: memref<16x128xf32, #tpu.memory_space<vmem>>) attributes {dimension_semantics = [#tpu.dimension_semantics<parallel>, #tpu.dimension_semantics<parallel>, #tpu.dimension_semantics<arbitrary>], iteration_bounds = array<i64: 1, 1, 1>, scalar_prefetch = 0 : i64, scratch_operands = 1 : i64, tpu.core_type = #tpu.core_type<tc>, window_params = [{transform_indices = @transform_0, window_bounds = array<i64: 16, 128>}, {transform_indices = @transform_1, window_bounds = array<i64: 128, 128>}, {transform_indices = @transform_2, window_bounds = array<i64: 128, 128>}, {transform_indices = @transform_3, window_bounds = array<i64: 16, 128>}]} {
    %c0_i32 = arith.constant 0 : i32
    %0 = arith.cmpi eq, %arg2, %c0_i32 : i32
    %1 = arith.extui %0 : i1 to i32
    %c0_i32_0 = arith.constant 0 : i32
    %2 = arith.cmpi ne, %1, %c0_i32_0 : i32
    scf.if %2 {
      %cst_17 = arith.constant 0.000000e+00 : f32
      %27 = vector.broadcast %cst_17 : f32 to vector<16x128xf32>
      %c0_18 = arith.constant 0 : index
      %c0_19 = arith.constant 0 : index
      %28 = vector.load %arg7[%c0_18, %c0_19] : memref<16x128xf32, #tpu.memory_space<vmem>>, vector<16x128xf32>
      tpu.vector_store %arg7[%c0_18, %c0_19], %27 {strides = array<i32>} : memref<16x128xf32, #tpu.memory_space<vmem>>, vector<16x128xf32>,
    } else {
    }
    %c0 = arith.constant 0 : index
    %c0_1 = arith.constant 0 : index
    %3 = vector.load %arg3[%c0, %c0_1] : memref<16x128xf32, #tpu.memory_space<vmem>>, vector<16x128xf32>
    %c0_2 = arith.constant 0 : index
    %c0_3 = arith.constant 0 : index
    %4 = vector.load %arg4[%c0_2, %c0_3] : memref<128x128xf32, #tpu.memory_space<vmem>>, vector<128x128xf32>
    %cst = arith.constant dense<0.000000e+00> : vector<16x128xf32>
    %5 = tpu.matmul %3, %4, %cst {dimension_numbers = #tpu.dot_dimension_numbers<[1], [0], [0], [1], [0, 0, 1, 1], [], []>} : vector<16x128xf32>, vector<128x128xf32>, vector<16x128xf32> -> vector<16x128xf32>
    %cst_4 = arith.constant 5.000000e-01 : f32
    %6 = vector.broadcast %cst_4 : f32 to vector<16x128xf32>
    %7 = arith.mulf %6, %5 : vector<16x128xf32>
    %8 = arith.mulf %5, %5 : vector<16x128xf32>
    %cst_5 = arith.constant 4.471500e-02 : f32
    %9 = vector.broadcast %cst_5 : f32 to vector<16x128xf32>
    %10 = arith.mulf %9, %8 : vector<16x128xf32>
    %11 = arith.mulf %10, %5 : vector<16x128xf32>
    %12 = arith.addf %5, %11 : vector<16x128xf32>
    %cst_6 = arith.constant 0.797884583 : f32
    %13 = vector.broadcast %cst_6 : f32 to vector<16x128xf32>
    %14 = arith.mulf %13, %12 : vector<16x128xf32>
    %15 = math.tanh %14 : vector<16x128xf32>
    %cst_7 = arith.constant 1.000000e+00 : f32
    %16 = vector.broadcast %cst_7 : f32 to vector<16x128xf32>
    %17 = arith.addf %16, %15 : vector<16x128xf32>
    %18 = arith.mulf %7, %17 : vector<16x128xf32>
    %c0_8 = arith.constant 0 : index
    %c0_9 = arith.constant 0 : index
    %19 = vector.load %arg7[%c0_8, %c0_9] : memref<16x128xf32, #tpu.memory_space<vmem>>, vector<16x128xf32>
    %c0_10 = arith.constant 0 : index
    %c0_11 = arith.constant 0 : index
    %20 = vector.load %arg5[%c0_10, %c0_11] : memref<128x128xf32, #tpu.memory_space<vmem>>, vector<128x128xf32>
    %cst_12 = arith.constant dense<0.000000e+00> : vector<16x128xf32>
    %21 = tpu.matmul %18, %20, %cst_12 {dimension_numbers = #tpu.dot_dimension_numbers<[1], [0], [0], [1], [0, 0, 1, 1], [], []>} : vector<16x128xf32>, vector<128x128xf32>, vector<16x128xf32> -> vector<16x128xf32>
    %22 = arith.addf %19, %21 : vector<16x128xf32>
    %c0_13 = arith.constant 0 : index
    %c0_14 = arith.constant 0 : index
    %23 = vector.load %arg7[%c0_13, %c0_14] : memref<16x128xf32, #tpu.memory_space<vmem>>, vector<16x128xf32>
    tpu.vector_store %arg7[%c0_13, %c0_14], %22 {strides = array<i32>} : memref<16x128xf32, #tpu.memory_space<vmem>>, vector<16x128xf32>,
    %c0_i32_15 = arith.constant 0 : i32
    %24 = arith.cmpi eq, %arg2, %c0_i32_15 : i32
    %25 = arith.extui %24 : i1 to i32
    %c0_i32_16 = arith.constant 0 : i32
    %26 = arith.cmpi ne, %25, %c0_i32_16 : i32
    scf.if %26 {
      %c0_17 = arith.constant 0 : index
      %c0_18 = arith.constant 0 : index
      %27 = vector.load %arg7[%c0_17, %c0_18] : memref<16x128xf32, #tpu.memory_space<vmem>>, vector<16x128xf32>
      %c0_19 = arith.constant 0 : index
      %c0_20 = arith.constant 0 : index
      %28 = vector.load %arg6[%c0_19, %c0_20] : memref<16x128xf32, #tpu.memory_space<vmem>>, vector<16x128xf32>
      tpu.vector_store %arg6[%c0_19, %c0_20], %27 {strides = array<i32>} : memref<16x128xf32, #tpu.memory_space<vmem>>, vector<16x128xf32>,
    } else {
    }
    return
  }
  func.func @transform_0(%arg0: i32, %arg1: i32, %arg2: i32) -> (i32, i32) {
    %c0_i32 = arith.constant 0 : i32
    %c0_i32_0 = arith.constant 0 : i32
    return %arg0, %c0_i32 : i32, i32
  }
  func.func @transform_1(%arg0: i32, %arg1: i32, %arg2: i32) -> (i32, i32) {
    %c0_i32 = arith.constant 0 : i32
    %c0_i32_0 = arith.constant 0 : i32
    return %c0_i32, %arg2 : i32, i32
  }
  func.func @transform_2(%arg0: i32, %arg1: i32, %arg2: i32) -> (i32, i32) {
    %c0_i32 = arith.constant 0 : i32
    return %arg2, %arg1 : i32, i32
  }
  func.func @transform_3(%arg0: i32, %arg1: i32, %arg2: i32) -> (i32, i32) {
    %c0_i32 = arith.constant 0 : i32
    return %arg0, %arg1 : i32, i32
  }
}

</mosaic_0001>

<bundles_post_ra>
// kernel: tpu_custom_call.1
= control target key start
LH: loop header
LB: loop body
LE: loop exit
PB: predicated region body
PF: predicated region fallthrough
CT: control target
= control target key end

     0   :  { %8 = vsyncpa [#allocation4], 0  ;;  %s662_s0 = inlined_call_operand.hbm [shape: f32[16,128], index: 0, kind: input, shape index: {}]   ;;  %s663_s1 = inlined_call_operand.hbm [shape: f32[128,128], index: 1, kind: input, shape index: {}]   ;;  %s664_s2 = inlined_call_operand.hbm [shape: f32[128,128], index: 2, kind: input, shape index: {}]   ;;  %s665_s3 = inlined_call_operand.hbm [shape: f32[16,128], index: 3, kind: output, shape index: {}]  }
   0x1   :  { %9 = vsyncpa [#allocation7], 0 }
   0x2   :  { %10 = vsyncpa [#allocation5], 0  ;;  %s569_s12 = smov [#allocation6]   ;;  %s570_s14 = smov [#allocation3]  }
   0x3   :  { %s28_s13 = sshll.u32 %s569_s12, 4  ;;  %s16_s15 = sshll.u32 %s570_s14, 4  ;;  %s29_s13 = int_to_ptr.vmem [resolvable:$true] %s28_s13  ;;  %s595_s15 = int_to_ptr.vmem [resolvable:$true] %s16_s15 }
   0x4   :  { %s475_s18 = scalar_lea.hbm %s663_s1, 2048 }
   0x5   :  { %p476_p0 = scmp.ne.s32.totalorder %s663_s1, %s475_s18  ;;  %p479_p1 = scmp.lt.u32.totalorder %s475_s18, %s663_s1 }
   0x7   :  { %p481_p2 = pnand %p479_p1, %p476_p0 }
   0x9   :  { %484 = shalt.err (!%p481_p2)
}
   0xa   :  { %s485_s23 = scalar_lea.vmem %s29_s13, 2048  ;;  %p490_p4 = scmp.lt.s32.totalorder %s29_s13, %s29_s13 }
   0xb   :  { %p486_p3 = scmp.ne.s32.totalorder %s29_s13, %s485_s23  ;;  %p491_p5 = scmp.lt.s32.totalorder %s485_s23, %s485_s23 }
   0xd   :  { %p492_p6 = por %p491_p5, %p490_p4 }
   0xf   :  { %p493_p7 = pnand %p492_p6, %p486_p3 }
  0x11   :  { %496 = shalt.err (!%p493_p7)
}
  0x12   :  { %s571_s24 = smov 128   ;;  %s572_s25 = smov 8  }
  0x13   :  { %34 = dma.hbm_to_vmem [thread:$0]  %s663_s1, 2048, %s29_s13, [#allocation7], %s571_s24, %s571_s24, %s572_s25  }
  0x14   :  { %s497_s30 = scalar_lea.hbm %s662_s0, 256 }
  0x15   :  { %p498_p8 = scmp.ne.s32.totalorder %s662_s0, %s497_s30  ;;  %p501_p9 = scmp.lt.u32.totalorder %s497_s30, %s662_s0 }
  0x17   :  { %p503_p10 = pnand %p501_p9, %p498_p8 }
  0x19   :  { %506 = shalt.err (!%p503_p10)
}
  0x1a   :  { %s507_s8 = scalar_lea.vmem %s595_s15, 256  ;;  %p512_p12 = scmp.lt.s32.totalorder %s595_s15, %s595_s15 }
  0x1b   :  { %p508_p11 = scmp.ne.s32.totalorder %s595_s15, %s507_s8  ;;  %p513_p13 = scmp.lt.s32.totalorder %s507_s8, %s507_s8 }
  0x1d   :  { %p514_p0 = por %p513_p13, %p512_p12 }
  0x1f   :  { %p515_p1 = pnand %p514_p0, %p508_p11 }
  0x21   :  { %518 = shalt.err (!%p515_p1)
}
  0x22   :  { %22 = dma.hbm_to_vmem [thread:$0]  %s662_s0, 256, %s595_s15, [#allocation4], %s571_s24, %s571_s24, %s572_s25  }
  0x23   :  { %s573_s10 = smov [#allocation8]   ;;  %s519_s14 = scalar_lea.hbm %s664_s2, 2048 }
  0x24   :  { %s40_s11 = sshll.u32 %s573_s10, 4  ;;  %p520_p2 = scmp.ne.s32.totalorder %s664_s2, %s519_s14  ;;  %s41_s11 = int_to_ptr.vmem [resolvable:$true] %s40_s11 }
  0x25   :  { %p523_p3 = scmp.lt.u32.totalorder %s519_s14, %s664_s2 }
  0x27   :  { %p525_p4 = pnand %p523_p3, %p520_p2 }
  0x29   :  { %528 = shalt.err (!%p525_p4)
}
  0x2a   :  { %s529_s20 = scalar_lea.vmem %s41_s11, 2048  ;;  %p534_p6 = scmp.lt.s32.totalorder %s41_s11, %s41_s11 }
  0x2b   :  { %p530_p5 = scmp.ne.s32.totalorder %s41_s11, %s529_s20  ;;  %p535_p7 = scmp.lt.s32.totalorder %s529_s20, %s529_s20 }
  0x2d   :  { %p536_p8 = por %p535_p7, %p534_p6 }
  0x2f   :  { %p537_p9 = pnand %p536_p8, %p530_p5 }
  0x31   :  { %540 = shalt.err (!%p537_p9)
}
  0x32   :  { %46 = dma.hbm_to_vmem [thread:$0]  %s664_s2, 2048, %s41_s11, [#allocation7], %s571_s24, %s571_s24, %s572_s25  }
  0x33   :  { %563 = dma.done.wait [#allocation4], 256  }
  0x34   :  { %564 = vsyncadd [#allocation4], 4294967040 }
  0x35   :  { %565 = dma.done.wait [#allocation7], 4096  }
  0x36   :  { %566 = vsyncadd [#allocation7], 4294963200  ;;  %v64_v0 = vld [vmem:[#allocation6] sm:$0xff]  ;;  %v65_v1 = vld [vmem:[#allocation6 + $0x8] sm:$0xff]  ;;  %s574_s2 = smov [#allocation9]  }
  0x37   :  { %v66_v2 = vld [vmem:[#allocation6 + $0x10] sm:$0xff]  ;;  %v401_v3 = vpack.c.bf16 %v65_v1, %v64_v0  ;;  %v67_v4 = vld [vmem:[#allocation6 + $0x18] sm:$0xff]  ;;  %v68_v6 = vld [vmem:[#allocation6 + $0x20] sm:$0xff]  ;;  %s282_s21 = sshll.u32 %s574_s2, 4  ;;  %s283_s21 = int_to_ptr.vmem [resolvable:$true] %s282_s21 }
  0x38   :  { %v405_v5 = vpack.c.bf16 %v67_v4, %v66_v2  ;;  %v69_v7 = vld [vmem:[#allocation6 + $0x28] sm:$0xff]  ;;  %v70_v9 = vld [vmem:[#allocation6 + $0x30] sm:$0xff]  ;;  %v71_v11 = vld [vmem:[#allocation6 + $0x38] sm:$0xff]  ;;  %s541_s22 = scalar_lea.vmem %s283_s21, 256  ;;  %p546_p11 = scmp.lt.s32.totalorder %s283_s21, %s283_s21 }
  0x39   :  { %402 = vmatprep.subr.bf16.mxu0 %v401_v3  ;;  %v409_v8 = vpack.c.bf16 %v69_v7, %v68_v6  ;;  %v62_v10 = vld [vmem:[#allocation3] sm:$0xff]  ;;  %v175_v12 = vld [vmem:[#allocation8] sm:$0xff]  ;;  %v176_v13 = vld [vmem:[#allocation8 + $0x8] sm:$0xff]  ;;  %v413_v15 = vpack.c.bf16 %v71_v11, %v70_v9  ;;  %p542_p10 = scmp.ne.s32.totalorder %s283_s21, %s541_s22  ;;  %p547_p12 = scmp.lt.s32.totalorder %s541_s22, %s541_s22 }
  0x3a   :  { %404 = vmatpush3.bf16.msra.mxu0 %v401_v3  ;;  %363 = vmatprep.mubr.f32.mxu0 %v62_v10  ;;  %v433_v14 = vpack.c.bf16 %v176_v13, %v175_v12  ;;  %v72_v16 = vld [vmem:[#allocation6 + $0x40] sm:$0xff]  ;;  %v73_v17 = vld [vmem:[#allocation6 + $0x48] sm:$0xff]  ;;  %v74_v19 = vld [vmem:[#allocation6 + $0x50] sm:$0xff] }
  0x3b   :  { %406 = vmatprep.subr.bf16.mxu0 %v405_v5  ;;  %v417_v18 = vpack.c.bf16 %v73_v17, %v72_v16  ;;  %v75_v20 = vld [vmem:[#allocation6 + $0x58] sm:$0xff]  ;;  %v76_v22 = vld [vmem:[#allocation6 + $0x60] sm:$0xff]  ;;  %v77_v23 = vld [vmem:[#allocation6 + $0x68] sm:$0xff]  ;;  %p548_p13 = por %p547_p12, %p546_p11 }
  0x3c   :  { %434 = vmatprep.subr.bf16.mxu1 %v433_v14  ;;  %v421_v21 = vpack.c.bf16 %v75_v20, %v74_v19  ;;  %v425_v24 = vpack.c.bf16 %v77_v23, %v76_v22  ;;  %v78_v25 = vld [vmem:[#allocation6 + $0x70] sm:$0xff]  ;;  %v79_v26 = vld [vmem:[#allocation6 + $0x78] sm:$0xff]  ;;  %v179_v32 = vld [vmem:[#allocation8 + $0x20] sm:$0xff] }
  0x3d   :  { %436 = vmatpush3.bf16.msra.mxu1 %v433_v14  ;;  %v429_v27 = vpack.c.bf16 %v79_v26, %v78_v25  ;;  %v63_v28 = vld [vmem:[#allocation3 + $0x8] sm:$0xff]  ;;  %v177_v29 = vld [vmem:[#allocation8 + $0x10] sm:$0xff]  ;;  %v180_v33 = vld [vmem:[#allocation8 + $0x28] sm:$0xff]  ;;  %p549_p0 = pnand %p548_p13, %p542_p10 }
  0x3e   :  { %408 = vmatpush3.bf16.msra.mxu0 %v405_v5  ;;  %v178_v30 = vld [vmem:[#allocation8 + $0x18] sm:$0xff]  ;;  %v441_v34 = vpack.c.bf16 %v180_v33, %v179_v32  ;;  %v181_v35 = vld [vmem:[#allocation8 + $0x30] sm:$0xff]  ;;  %v183_v38 = vld [vmem:[#allocation8 + $0x40] sm:$0xff] }
  0x3f   :  { %410 = vmatprep.subr.bf16.mxu0 %v409_v8  ;;  %v437_v31 = vpack.c.bf16 %v178_v30, %v177_v29  ;;  %v182_v36 = vld [vmem:[#allocation8 + $0x38] sm:$0xff]  ;;  %v184_v39 = vld [vmem:[#allocation8 + $0x48] sm:$0xff]  ;;  %v185_v41 = vld [vmem:[#allocation8 + $0x50] sm:$0xff] }
  0x40   :  { %v445_v37 = vpack.c.bf16 %v182_v36, %v181_v35  ;;  %v449_v40 = vpack.c.bf16 %v184_v39, %v183_v38  ;;  %v186_v42 = vld [vmem:[#allocation8 + $0x58] sm:$0xff]  ;;  %v187_v43 = vld [vmem:[#allocation8 + $0x60] sm:$0xff]  ;;  %v188_v45 = vld [vmem:[#allocation8 + $0x68] sm:$0xff] }
  0x41   :  { %438 = vmatprep.subr.bf16.mxu1 %v437_v31  ;;  %v453_v44 = vpack.c.bf16 %v186_v42, %v185_v41  ;;  %v457_v46 = vpack.c.bf16 %v188_v45, %v187_v43  ;;  %v189_v47 = vld [vmem:[#allocation8 + $0x70] sm:$0xff]  ;;  %v190_v48 = vld [vmem:[#allocation8 + $0x78] sm:$0xff] }
  0x42   :  { %412 = vmatpush3.bf16.msra.mxu0 %v409_v8  ;;  %440 = vmatpush3.bf16.msra.mxu1 %v437_v31  ;;  %v461_v49 = vpack.c.bf16 %v190_v48, %v189_v47 }
  0x43   :  { %414 = vmatprep.subr.bf16.mxu0 %v413_v15  ;;  %442 = vmatprep.subr.bf16.mxu1 %v441_v34 }
  0x46   :  { %416 = vmatpush3.bf16.msra.mxu0 %v413_v15  ;;  %444 = vmatpush3.bf16.msra.mxu1 %v441_v34 }
  0x47   :  { %418 = vmatprep.subr.bf16.mxu0 %v417_v18  ;;  %446 = vmatprep.subr.bf16.mxu1 %v445_v37 }
  0x4a   :  { %420 = vmatpush3.bf16.msra.mxu0 %v417_v18  ;;  %448 = vmatpush3.bf16.msra.mxu1 %v445_v37 }
  0x4b   :  { %422 = vmatprep.subr.bf16.mxu0 %v421_v21  ;;  %450 = vmatprep.subr.bf16.mxu1 %v449_v40 }
  0x4e   :  { %424 = vmatpush3.bf16.msra.mxu0 %v421_v21  ;;  %452 = vmatpush3.bf16.msra.mxu1 %v449_v40 }
  0x4f   :  { %426 = vmatprep.subr.bf16.mxu0 %v425_v24  ;;  %454 = vmatprep.subr.bf16.mxu1 %v453_v44 }
  0x52   :  { %428 = vmatpush3.bf16.msra.mxu0 %v425_v24  ;;  %456 = vmatpush3.bf16.msra.mxu1 %v453_v44 }
  0x53   :  { %430 = vmatprep.subr.bf16.mxu0 %v429_v27  ;;  %458 = vmatprep.subr.bf16.mxu1 %v457_v46 }
  0x56   :  { %432 = vmatpush3.bf16.msra.mxu0 %v429_v27  ;;  %460 = vmatpush3.bf16.msra.mxu1 %v457_v46 }
  0x57   :  { %462 = vmatprep.subr.bf16.mxu1 %v461_v49 }
  0x59   :  { %364 = vmatmul.mubr.f32.vlgmr.msra.gmra.mrb[0].mxu0 %v63_v28 }
  0x5a   :  { %464 = vmatpush3.bf16.msra.mxu1 %v461_v49 }
 0x12c   :  { %v365_v50 = vpop.f32.mrb[0].mxu0 }
 0x12d   :  { %v158_v51 = vmul.f32 %v365_v50, %v365_v50  ;;  %v146_v52 = vpop.f32.mrb[1].mxu0  ;;  %v156_v3 = vmul.f32 0.5, %v365_v50 }
 0x12e   :  { %v157_v53 = vmul.f32 %v146_v52, %v146_v52  ;;  %v155_v1 = vmul.f32 0.5, %v146_v52 }
 0x12f   :  { %v160_v54 = vmul.f32 0.044715, %v158_v51 }
 0x130   :  { %v159_v55 = vmul.f32 0.044715, %v157_v53 }
 0x131   :  { %v162_v56 = vmul.f32 %v365_v50, %v160_v54 }
 0x132   :  { %v161_v57 = vmul.f32 %v159_v55, %v146_v52 }
 0x133   :  { %v164_v58 = vadd.f32 %v365_v50, %v162_v56 }
 0x134   :  { %v163_v59 = vadd.f32 %v161_v57, %v146_v52 }
 0x135   :  { %v166_v60 = vmul.f32 0.7978846, %v164_v58 }
 0x136   :  { %v165_v61 = vmul.f32 0.7978846, %v163_v59 }
 0x137   :  { %471 = vtanh.f32 %v166_v60 }
 0x138   :  { %473 = vtanh.f32 %v165_v61 }
 0x141   :  { %v472_v62 = vpop.eup %471 }
 0x142   :  { %v474_v63 = vpop.eup %473  ;;  %v170_v0 = vadd.f32 1.0, %v472_v62 }
 0x143   :  { %v169_v2 = vadd.f32 1.0, %v474_v63 }
 0x144   :  { %v172_v5 = vmul.f32 %v170_v0, %v156_v3 }
 0x145   :  { %v171_v4 = vmul.f32 %v169_v2, %v155_v1 }
 0x147   :  { %398 = vmatprep.mubr.f32.mxu1 %v171_v4 }
 0x148   :  { %399 = vmatmul.mubr.f32.vlgmr.msra.gmra.mrb[0].mxu1 %v172_v5 }
 0x21b   :  { %v400_v6 = vpop.f32.mrb[0].mxu1 }
 0x21c   :  { %276 = vst [vmem:[#allocation9 + $0x8] sm:$0xff] %v400_v6  ;;  %v257_v7 = vpop.f32.mrb[1].mxu1 }
 0x21d   :  { %275 = vst [vmem:[#allocation9] sm:$0xff] %v257_v7 }
 0x21e   :  { %552 = shalt.err (!%p549_p0)
}
 0x21f   :  { %s553_s27 = scalar_lea.hbm %s665_s3, 256 }
 0x220   :  { %p554_p1 = scmp.ne.s32.totalorder %s665_s3, %s553_s27  ;;  %p557_p2 = scmp.lt.u32.totalorder %s553_s27, %s665_s3 }
 0x222   :  { %p559_p3 = pnand %p557_p2, %p554_p1 }
 0x224   :  { %562 = shalt.err (!%p559_p3)
}
 0x225   :  { %288 = dma.vmem_to_hbm [thread:$0]  %s283_s21, 256, %s665_s3, [#allocation5], %s571_s24, %s571_s24, %s572_s25  }
 0x226   :  { %567 = dma.done.wait [#allocation5], 256  }
 0x227   :  { %568 = vsyncadd [#allocation5], 4294967040 }
 0x228   :  { %292 = vsyncpa [#allocation4], 1 }
 0x229   :  { %293 = vsyncpa [#allocation7], 1 }
 0x22a   :  { %294 = vsyncpa [#allocation5], 1 }

</bundles_post_ra>
